<compile_context>
chip_gen: v6e
topology: v6e:2x2x1
jax: 0.10.0
libtpu: 0.0.40
codegen_flags: <defaults>
</compile_context>

<pallas_src>
import functools

import jax
import jax.numpy as jnp
from jax import lax
from jax.experimental import pallas as pl
from jax.experimental.pallas import tpu as pltpu


def _bn_filtered_kernel(x_ref, gamma_ref, beta_ref, o_ref, *, thres, n_elems):
    """Filtered batch norm for one channel tile.

    x_ref:     (N, c_tile, HW)  input block
    gamma_ref: (1, c_tile, 1)   scale
    beta_ref:  (1, c_tile, 1)   shift
    o_ref:     (N, c_tile, HW)  output block
    """
    eps = 1e-10
    L = float(n_elems)

    x = x_ref[...].astype(jnp.float32)                          # (N, ct, HW)

    # First-pass statistics (torch.mean / torch.var unbiased), per channel.
    mean = jnp.sum(x, axis=(0, 2), keepdims=True) * (1.0 / L)   # (1, ct, 1)
    d = x - mean
    d2 = d * d
    var = jnp.sum(d2, axis=(0, 2), keepdims=True) * (1.0 / (L - 1.0))

    # Outlier filter: |(x-mean)/sqrt(var+eps)| < thres  <=>  d2 < thres^2*(var+eps)
    # (no `normalized` temporary, no per-element divide).
    cutoff = (thres * thres) * (var + eps)
    mask = d2 < cutoff                                           # bool (N, ct, HW)

    # Filtered statistics from centered sums:
    #   fmean = mean + off,   off = sum_sel(d) / cnt
    #   fvar  = sum_sel(d2) / cnt - off^2        (exact identity, d is centered)
    cnt = jnp.sum(jnp.where(mask, 1.0, 0.0), axis=(0, 2), keepdims=True)
    inv_cnt = 1.0 / cnt                                          # per-channel only
    off = jnp.sum(jnp.where(mask, d, 0.0), axis=(0, 2), keepdims=True) * inv_cnt
    fmean = mean + off
    fvar = (jnp.sum(jnp.where(mask, d2, 0.0), axis=(0, 2), keepdims=True) * inv_cnt
            - off * off)

    # Fold params into one per-channel scale/shift -> one FMA per element.
    gamma = gamma_ref[...].astype(jnp.float32)                   # (1, ct, 1)
    beta = beta_ref[...].astype(jnp.float32)
    scale = gamma * lax.rsqrt(fvar + eps)
    shift = beta - fmean * scale
    o_ref[...] = (x * scale + shift).astype(o_ref.dtype)


def _choose_c_tile(C, N, HW, dtype_bytes, budget_bytes=4 << 20):
    """Largest channel tile whose input block stays within ~budget_bytes."""
    per_chan = max(1, N * HW * dtype_bytes)
    max_tile = max(1, budget_bytes // per_chan)
    if C <= max_tile:
        return C                                   # full C extent (always legal)
    divs = [d for d in range(1, C + 1) if C % d == 0 and d <= max_tile]
    mult8 = [d for d in divs if d % 8 == 0]
    return max(mult8) if mult8 else max(divs)


def bn2d_filtered(xorig, gamma, beta, thres=4.0):
    """xorig: (N, C, H, W) NCHW; gamma/beta: (1, C, 1, 1). Returns (N, C, H, W)."""
    N, C, H, W = xorig.shape
    HW = H * W
    L = N * HW

    # Free reshapes only — no HBM transpose passes.
    x3 = xorig.reshape(N, C, HW)
    g3 = gamma.reshape(1, C, 1).astype(jnp.float32)
    b3 = beta.reshape(1, C, 1).astype(jnp.float32)

    c_tile = _choose_c_tile(C, N, HW, jnp.dtype(xorig.dtype).itemsize)
    grid = (C // c_tile,)

    # TODO(synk): for very large L (= N*H*W) where even a c_tile=1 block
    # exceeds the VMEM budget, restructure to a 2-D grid with an L reduction
    # axis and per-channel accumulators (multi-sweep) instead of full-L blocks.

    kern = functools.partial(_bn_filtered_kernel, thres=float(thres), n_elems=L)

    out3 = pl.pallas_call(
        kern,
        out_shape=jax.ShapeDtypeStruct((N, C, HW), xorig.dtype),
        grid=grid,
        in_specs=[
            pl.BlockSpec((N, c_tile, HW), lambda c: (0, c, 0)),
            pl.BlockSpec((1, c_tile, 1), lambda c: (0, c, 0)),
            pl.BlockSpec((1, c_tile, 1), lambda c: (0, c, 0)),
        ],
        out_specs=pl.BlockSpec((N, c_tile, HW), lambda c: (0, c, 0)),
        compiler_params=pltpu.CompilerParams(
            dimension_semantics=("parallel",),
            vmem_limit_bytes=48 * 1024 * 1024,
        ),
    )(x3, g3, b3)

    return out3.reshape(N, C, H, W)


def _reference(xorig, gamma, beta, thres=4.0):
    """Pure-JAX reference mirroring the PyTorch forward exactly."""
    N, C, H, W = xorig.shape
    x = jnp.transpose(xorig, (1, 0, 2, 3)).reshape(C, -1)
    L = x.shape[1]
    eps = 1e-10
    mean = jnp.mean(x, axis=-1, keepdims=True)
    var = jnp.sum((x - mean) ** 2, axis=-1, keepdims=True) / (L - 1)
    normalized = (x - mean) / jnp.sqrt(var + eps)
    sel = ((normalized < thres) & (normalized > -thres)).astype(jnp.float32)
    ssum = jnp.sum(sel, axis=-1, keepdims=True)
    fmean = jnp.sum(x * sel, axis=-1, keepdims=True) / ssum
    fvar = jnp.sum(((x - fmean) ** 2) * sel, axis=-1, keepdims=True) / ssum
    fmean = fmean.reshape(1, C, 1, 1)
    fvar = fvar.reshape(1, C, 1, 1)
    return gamma * (xorig - fmean) / jnp.sqrt(fvar + eps) + beta


if __name__ == "__main__":
    key = jax.random.PRNGKey(0)
    N, C, H, W = 2, 4, 16, 16

    x = jax.random.normal(key, (N, C, H, W), dtype=jnp.float32) * 2.0
    # Deterministic parameter init matching the module's __init__.
    gamma = jnp.ones((1, C, 1, 1), dtype=jnp.float32)
    beta = jnp.zeros((1, C, 1, 1), dtype=jnp.float32)

    out = bn2d_filtered(x, gamma, beta, thres=4.0)
    out = jax.block_until_ready(out)

    ref = _reference(x, gamma, beta, thres=4.0)
    assert out.shape == (N, C, H, W)
    assert jnp.allclose(out, ref, atol=1e-5, rtol=1e-5), float(
        jnp.max(jnp.abs(out - ref)))

    print("KERNEL_OK")
</pallas_src>

<mosaic_0001>
module attributes {stable_mosaic.version = 11 : i64} {
  func.func @_bn_filtered_kernel(%arg0: i32, %arg1: memref<2x4x256xf32, #tpu.memory_space<vmem>>, %arg2: memref<1x4x1xf32, #tpu.memory_space<vmem>>, %arg3: memref<1x4x1xf32, #tpu.memory_space<vmem>>, %arg4: memref<2x4x256xf32, #tpu.memory_space<vmem>>) attributes {dimension_semantics = [#tpu.dimension_semantics<parallel>], iteration_bounds = array<i64: 1>, scalar_prefetch = 0 : i64, scratch_operands = 0 : i64, tpu.core_type = #tpu.core_type<tc>, window_params = [{transform_indices = @transform_0, window_bounds = array<i64: 2, 4, 256>}, {transform_indices = @transform_1, window_bounds = array<i64: 1, 4, 1>}, {transform_indices = @transform_2, window_bounds = array<i64: 1, 4, 1>}, {transform_indices = @transform_3, window_bounds = array<i64: 2, 4, 256>}]} {
    %c0 = arith.constant 0 : index
    %c0_0 = arith.constant 0 : index
    %c0_1 = arith.constant 0 : index
    %0 = vector.load %arg1[%c0, %c0_0, %c0_1] : memref<2x4x256xf32, #tpu.memory_space<vmem>>, vector<2x4x256xf32>
    %cst = arith.constant dense<0.000000e+00> : vector<4xf32>
    %1 = vector.multi_reduction <add>, %0, %cst [0, 2] : vector<2x4x256xf32> to vector<4xf32>
    %2 = vector.shape_cast %1 : vector<4xf32> to vector<1x4x1xf32>
    %cst_2 = arith.constant 0.001953125 : f32
    %3 = vector.broadcast %cst_2 : f32 to vector<1x4x1xf32>
    %4 = arith.mulf %2, %3 : vector<1x4x1xf32>
    %5 = vector.broadcast %4 : vector<1x4x1xf32> to vector<2x4x256xf32>
    %6 = arith.subf %0, %5 : vector<2x4x256xf32>
    %7 = arith.mulf %6, %6 : vector<2x4x256xf32>
    %cst_3 = arith.constant dense<0.000000e+00> : vector<4xf32>
    %8 = vector.multi_reduction <add>, %7, %cst_3 [0, 2] : vector<2x4x256xf32> to vector<4xf32>
    %9 = vector.shape_cast %8 : vector<4xf32> to vector<1x4x1xf32>
    %cst_4 = arith.constant 0.00195694715 : f32
    %10 = vector.broadcast %cst_4 : f32 to vector<1x4x1xf32>
    %11 = arith.mulf %9, %10 : vector<1x4x1xf32>
    %cst_5 = arith.constant 1.000000e-10 : f32
    %12 = vector.broadcast %cst_5 : f32 to vector<1x4x1xf32>
    %13 = arith.addf %11, %12 : vector<1x4x1xf32>
    %cst_6 = arith.constant 1.600000e+01 : f32
    %14 = vector.broadcast %cst_6 : f32 to vector<1x4x1xf32>
    %15 = arith.mulf %14, %13 : vector<1x4x1xf32>
    %16 = vector.broadcast %15 : vector<1x4x1xf32> to vector<2x4x256xf32>
    %17 = arith.cmpf olt, %7, %16 : vector<2x4x256xf32>
    %cst_7 = arith.constant 1.000000e+00 : f32
    %cst_8 = arith.constant 0.000000e+00 : f32
    %18 = vector.broadcast %cst_7 : f32 to vector<2x4x256xf32>
    %19 = vector.broadcast %cst_8 : f32 to vector<2x4x256xf32>
    %20 = arith.select %17, %18, %19 : vector<2x4x256xi1>, vector<2x4x256xf32>
    %cst_9 = arith.constant dense<0.000000e+00> : vector<4xf32>
    %21 = vector.multi_reduction <add>, %20, %cst_9 [0, 2] : vector<2x4x256xf32> to vector<4xf32>
    %22 = vector.shape_cast %21 : vector<4xf32> to vector<1x4x1xf32>
    %cst_10 = arith.constant 1.000000e+00 : f32
    %23 = vector.broadcast %cst_10 : f32 to vector<1x4x1xf32>
    %24 = arith.divf %23, %22 : vector<1x4x1xf32>
    %cst_11 = arith.constant 0.000000e+00 : f32
    %25 = vector.broadcast %cst_11 : f32 to vector<2x4x256xf32>
    %26 = arith.select %17, %6, %25 : vector<2x4x256xi1>, vector<2x4x256xf32>
    %cst_12 = arith.constant dense<0.000000e+00> : vector<4xf32>
    %27 = vector.multi_reduction <add>, %26, %cst_12 [0, 2] : vector<2x4x256xf32> to vector<4xf32>
    %28 = vector.shape_cast %27 : vector<4xf32> to vector<1x4x1xf32>
    %29 = arith.mulf %28, %24 : vector<1x4x1xf32>
    %30 = arith.addf %4, %29 : vector<1x4x1xf32>
    %cst_13 = arith.constant 0.000000e+00 : f32
    %31 = vector.broadcast %cst_13 : f32 to vector<2x4x256xf32>
    %32 = arith.select %17, %7, %31 : vector<2x4x256xi1>, vector<2x4x256xf32>
    %cst_14 = arith.constant dense<0.000000e+00> : vector<4xf32>
    %33 = vector.multi_reduction <add>, %32, %cst_14 [0, 2] : vector<2x4x256xf32> to vector<4xf32>
    %34 = vector.shape_cast %33 : vector<4xf32> to vector<1x4x1xf32>
    %35 = arith.mulf %34, %24 : vector<1x4x1xf32>
    %36 = arith.mulf %29, %29 : vector<1x4x1xf32>
    %37 = arith.subf %35, %36 : vector<1x4x1xf32>
    %c0_15 = arith.constant 0 : index
    %c0_16 = arith.constant 0 : index
    %c0_17 = arith.constant 0 : index
    %38 = vector.load %arg2[%c0_15, %c0_16, %c0_17] : memref<1x4x1xf32, #tpu.memory_space<vmem>>, vector<1x4x1xf32>
    %c0_18 = arith.constant 0 : index
    %c0_19 = arith.constant 0 : index
    %c0_20 = arith.constant 0 : index
    %39 = vector.load %arg3[%c0_18, %c0_19, %c0_20] : memref<1x4x1xf32, #tpu.memory_space<vmem>>, vector<1x4x1xf32>
    %cst_21 = arith.constant 1.000000e-10 : f32
    %40 = vector.broadcast %cst_21 : f32 to vector<1x4x1xf32>
    %41 = arith.addf %37, %40 : vector<1x4x1xf32>
    %42 = math.rsqrt %41 : vector<1x4x1xf32>
    %43 = arith.mulf %38, %42 : vector<1x4x1xf32>
    %44 = arith.mulf %30, %43 : vector<1x4x1xf32>
    %45 = arith.subf %39, %44 : vector<1x4x1xf32>
    %46 = vector.broadcast %43 : vector<1x4x1xf32> to vector<2x4x256xf32>
    %47 = arith.mulf %0, %46 : vector<2x4x256xf32>
    %48 = vector.broadcast %45 : vector<1x4x1xf32> to vector<2x4x256xf32>
    %49 = arith.addf %47, %48 : vector<2x4x256xf32>
    %c0_22 = arith.constant 0 : index
    %c0_23 = arith.constant 0 : index
    %c0_24 = arith.constant 0 : index
    %50 = vector.load %arg4[%c0_22, %c0_23, %c0_24] : memref<2x4x256xf32, #tpu.memory_space<vmem>>, vector<2x4x256xf32>
    tpu.vector_store %arg4[%c0_22, %c0_23, %c0_24], %49 {strides = array<i32>} : memref<2x4x256xf32, #tpu.memory_space<vmem>>, vector<2x4x256xf32>,
    return
  }
  func.func @transform_0(%arg0: i32) -> (i32, i32, i32) {
    %c0_i32 = arith.constant 0 : i32
    %c0_i32_0 = arith.constant 0 : i32
    %c0_i32_1 = arith.constant 0 : i32
    return %c0_i32, %arg0, %c0_i32_0 : i32, i32, i32
  }
  func.func @transform_1(%arg0: i32) -> (i32, i32, i32) {
    %c0_i32 = arith.constant 0 : i32
    %c0_i32_0 = arith.constant 0 : i32
    %c0_i32_1 = arith.constant 0 : i32
    return %c0_i32, %arg0, %c0_i32_0 : i32, i32, i32
  }
  func.func @transform_2(%arg0: i32) -> (i32, i32, i32) {
    %c0_i32 = arith.constant 0 : i32
    %c0_i32_0 = arith.constant 0 : i32
    %c0_i32_1 = arith.constant 0 : i32
    return %c0_i32, %arg0, %c0_i32_0 : i32, i32, i32
  }
  func.func @transform_3(%arg0: i32) -> (i32, i32, i32) {
    %c0_i32 = arith.constant 0 : i32
    %c0_i32_0 = arith.constant 0 : i32
    %c0_i32_1 = arith.constant 0 : i32
    return %c0_i32, %arg0, %c0_i32_0 : i32, i32, i32
  }
}

</mosaic_0001>

<bundles_post_ra>
// kernel: tpu_custom_call.1
= control target key start
LH: loop header
LB: loop body
LE: loop exit
PB: predicated region body
PF: predicated region fallthrough
CT: control target
= control target key end

     0   :  { %8 = vsyncpa [#allocation3], 0  ;;  %s353_s0 = inlined_call_operand.hbm [shape: f32[2,4,256], index: 0, kind: input, shape index: {}]   ;;  %s354_s1 = inlined_call_operand.vmem [shape: f32[1,4,1], index: 1, kind: input, shape index: {}]   ;;  %s355_s2 = inlined_call_operand.vmem [shape: f32[1,4,1], index: 2, kind: input, shape index: {}]   ;;  %s356_s3 = inlined_call_operand.hbm [shape: f32[2,4,256], index: 3, kind: output, shape index: {}]  }
   0x1   :  { %9 = vsyncpa [#allocation4], 0  ;;  %s261_s12 = smov [#allocation2]  }
   0x2   :  { %s15_s13 = sshll.u32 %s261_s12, 4  ;;  %s16_s13 = int_to_ptr.vmem [resolvable:$true] %s15_s13 }
   0x3   :  { %s225_s14 = scalar_lea.vmem %s16_s13, 256  ;;  %p230_p1 = scmp.lt.s32.totalorder %s16_s13, %s16_s13 }
   0x4   :  { %p226_p0 = scmp.ne.s32.totalorder %s16_s13, %s225_s14  ;;  %p231_p2 = scmp.lt.s32.totalorder %s225_s14, %s225_s14 }
   0x6   :  { %p232_p3 = por %p231_p2, %p230_p1 }
   0x8   :  { %p233_p4 = pnand %p232_p3, %p226_p0 }
   0xa   :  { %236 = shalt.err (!%p233_p4)
}
   0xb   :  { %s262_s15 = smov 128   ;;  %s263_s16 = smov 8  }
   0xc   :  { %21 = dma.hbm_to_vmem [thread:$0]  %s353_s0, 256, %s16_s13, [#allocation3], %s262_s15, %s262_s15, %s263_s16  }
   0xd   :  { %257 = dma.done.wait [#allocation3], 256  }
   0xe   :  { %258 = vsyncadd [#allocation3], 4294967040  ;;  %vm37_vm0 = vcmask 1043456   ;;  %v294_v0 = vld [vmem:[#allocation2] sm:$0xff]  ;;  %v296_v1 = vld [vmem:[#allocation2 + $0x8] sm:$0xff]  ;;  %v52_v13 = vlaneseq  ;;  %v265_v40 = vmov 0.0  }
   0xf   :  { %v33_v2 = vcombine.high %v294_v0, %v294_v0  ;;  %v34_v3 = vcombine.high %v296_v1, %v296_v1  ;;  %v38_v4 = vsel %vm37_vm0, %v294_v0, 0.0  ;;  %v41_v6 = vsel %vm37_vm0, %v296_v1, 0.0  ;;  %s267_s22 = smov [#allocation5]  }
  0x10   :  { %v264_v11 = vmov 839922192   ;;  %v53_v15 = vshrl.u32 %v52_v13, 7  ;;  %s190_s23 = sshll.u32 %s267_s22, 4  ;;  %s191_s23 = int_to_ptr.vmem [resolvable:$true] %s190_s23 }
  0x11   :  { %v39_v5 = vsel %vm37_vm0, %v33_v2, 0.0  ;;  %v43_v8 = vsel %vm37_vm0, %v34_v3, 0.0  ;;  %v50_v12 = vunpack.c.l.s4 %v264_v11  ;;  %p242_p6 = scmp.lt.s32.totalorder %s191_s23, %s191_s23 }
  0x12   :  { %v40_v7 = vadd.f32 %v39_v5, %v38_v4 }
  0x13   :  { %v51_v14 = vunpack.c.0.s8 %v50_v12 }
  0x14   :  { %v42_v9 = vadd.f32 %v41_v6, %v40_v7 }
  0x15   :  { %v308_v16 = vsub.s32 %v51_v14, %v53_v15 }
  0x16   :  { %v44_v10 = vadd.f32 %v43_v8, %v42_v9 }
  0x18   :  { %45 = vadd.xlane.f32.xlu0 %v44_v10  ;;  %v266_v10 = vmov 0  }
  0x19   :  { %209 = vset.pattern.permute.xlu1 %v266_v10  ;;  %210 = vset.pattern.permute.xlu0 %v266_v10 }
  0xa1   :  { %v46_v17 = vpop.xlane.xlu0 %45 }
  0xa2   :  { %v310_v18 = vmul.f32 0.001953125, %v46_v17 }
  0xa4   :  { %v55_v19 = vrot.slane %v310_v18, %v308_v16 }
  0xa6   :  { %v57_v20 = vsub.f32 %v294_v0, %v55_v19  ;;  %v58_v21 = vsub.f32 %v296_v1, %v55_v19 }
  0xa8   :  { %v59_v22 = vmul.f32 %v57_v20, %v57_v20  ;;  %v60_v23 = vmul.f32 %v58_v21, %v58_v21 }
  0xaa   :  { %v63_v24 = vcombine.high %v59_v22, %v59_v22  ;;  %v64_v25 = vcombine.high %v60_v23, %v60_v23  ;;  %v67_v26 = vsel %vm37_vm0, %v59_v22, 0.0  ;;  %v70_v29 = vsel %vm37_vm0, %v60_v23, 0.0 }
  0xac   :  { %v68_v27 = vsel %vm37_vm0, %v63_v24, 0.0  ;;  %v72_v31 = vsel %vm37_vm0, %v64_v25, 0.0 }
  0xad   :  { %v69_v28 = vadd.f32 %v68_v27, %v67_v26  ;;  %v149_v26 = vld [vmem:[%s355_s2] sm:$0xf] }
  0xaf   :  { %v71_v30 = vadd.f32 %v70_v29, %v69_v28 }
  0xb1   :  { %v73_v32 = vadd.f32 %v72_v31, %v71_v30 }
  0xb3   :  { %74 = vadd.xlane.f32.xlu0 %v73_v32 }
 0x13c   :  { %v75_v33 = vpop.xlane.xlu0 %74 }
 0x13d   :  { %v76_v34 = vmul.f32 0.0019569471, %v75_v33 }
 0x13f   :  { %v77_v35 = vadd.f32 1e-10, %v76_v34 }
 0x141   :  { %v78_v36 = vmul.f32 16.0, %v77_v35 }
 0x143   :  { %v86_v37 = vrot.slane %v78_v36, %v308_v16 }
 0x145   :  { %vm88_vm1 = vcmp.lt.f32.partialorder %v59_v22, %v86_v37  ;;  %vm89_vm2 = vcmp.lt.f32.partialorder %v60_v23, %v86_v37 }
 0x146   :  { %v128_v38 = vsel %vm88_vm1, %v59_v22, 0.0  ;;  %v129_v39 = vsel %vm89_vm2, %v60_v23, 0.0  ;;  %v90_v41 = vsel %vm88_vm1, 1.0, %v265_v40  ;;  %v91_v42 = vsel %vm89_vm2, 1.0, %v265_v40  ;;  %v148_v22 = vld [vmem:[%s354_s1] sm:$0xf] }
 0x147   :  { %v132_v43 = vcombine.high %v128_v38, %v128_v38  ;;  %v133_v44 = vcombine.high %v129_v39, %v129_v39  ;;  %v94_v45 = vcombine.high %v90_v41, %v90_v41  ;;  %v136_v46 = vsel %vm37_vm0, %v128_v38, 0.0  ;;  %s237_s1 = scalar_lea.vmem %s191_s23, 256 }
 0x148   :  { %v95_v48 = vcombine.high %v91_v42, %v91_v42  ;;  %v109_v49 = vsel %vm88_vm1, %v57_v20, 0.0  ;;  %v98_v51 = vsel %vm37_vm0, %v90_v41, 0.0  ;;  %v139_v54 = vsel %vm37_vm0, %v129_v39, 0.0  ;;  %p238_p5 = scmp.ne.s32.totalorder %s191_s23, %s237_s1  ;;  %p243_p7 = scmp.lt.s32.totalorder %s237_s1, %s237_s1 }
 0x149   :  { %v137_v47 = vsel %vm37_vm0, %v132_v43, 0.0  ;;  %v99_v52 = vsel %vm37_vm0, %v94_v45, 0.0  ;;  %v113_v53 = vcombine.high %v109_v49, %v109_v49  ;;  %v110_v56 = vsel %vm89_vm2, %v58_v21, 0.0 }
 0x14a   :  { %v138_v50 = vadd.f32 %v137_v47, %v136_v46  ;;  %v100_v55 = vadd.f32 %v99_v52, %v98_v51  ;;  %v101_v58 = vsel %vm37_vm0, %v91_v42, 0.0  ;;  %v117_v59 = vsel %vm37_vm0, %v109_v49, 0.0  ;;  %p244_p8 = por %p243_p7, %p242_p6 }
 0x14b   :  { %v118_v60 = vsel %vm37_vm0, %v113_v53, 0.0  ;;  %v141_v61 = vsel %vm37_vm0, %v133_v44, 0.0  ;;  %v103_v3 = vsel %vm37_vm0, %v95_v48, 0.0  ;;  %v114_v4 = vcombine.high %v110_v56, %v110_v56 }
 0x14c   :  { %v140_v57 = vadd.f32 %v139_v54, %v138_v50  ;;  %v102_v62 = vadd.f32 %v101_v58, %v100_v55  ;;  %v119_v63 = vadd.f32 %v118_v60, %v117_v59  ;;  %v120_v5 = vsel %vm37_vm0, %v110_v56, 0.0  ;;  %p245_p9 = pnand %p244_p8, %p238_p5 }
 0x14d   :  { %v122_v8 = vsel %vm37_vm0, %v114_v4, 0.0 }
 0x14e   :  { %v142_v2 = vadd.f32 %v141_v61, %v140_v57  ;;  %v104_v6 = vadd.f32 %v103_v3, %v102_v62  ;;  %v121_v7 = vadd.f32 %v120_v5, %v119_v63 }
 0x150   :  { %143 = vadd.xlane.f32.xlu0 %v142_v2  ;;  %105 = vadd.xlane.f32.xlu1 %v104_v6  ;;  %v123_v9 = vadd.f32 %v122_v8, %v121_v7 }
 0x154   :  { %124 = vadd.xlane.f32.xlu1 %v123_v9 }
 0x1d9   :  { %v106_v11 = vpop.xlane.xlu1 %105  ;;  %v144_v15 = vpop.xlane.xlu0 %143 }
 0x1da   :  { %213 = vrcp.f32 %v106_v11 }
 0x1dd   :  { %v125_v13 = vpop.xlane.xlu1 %124 }
 0x1e7   :  { %v214_v12 = vpop.eup %213 }
 0x1e8   :  { %v126_v14 = vmul.f32 %v214_v12, %v125_v13  ;;  %v145_v17 = vmul.f32 %v214_v12, %v144_v15 }
 0x1ea   :  { %v146_v19 = vmul.f32 %v126_v14, %v126_v14  ;;  %v127_v24 = vadd.f32 %v126_v14, %v310_v18 }
 0x1ec   :  { %v147_v20 = vsub.f32 %v145_v17, %v146_v19 }
 0x1ee   :  { %v150_v21 = vadd.f32 1e-10, %v147_v20 }
 0x1f0   :  { %215 = vrsqrt.f32 %v150_v21 }
 0x1fd   :  { %v216_v23 = vpop.eup %215 }
 0x1fe   :  { %v152_v25 = vmul.f32 %v216_v23, %v148_v22 }
 0x200   :  { %157 = vperm.xlu1 %209, %v152_v25   ;;  %v153_v27 = vmul.f32 %v152_v25, %v127_v24 }
 0x202   :  { %v154_v28 = vsub.f32 %v149_v26, %v153_v27 }
 0x204   :  { %171 = vperm.xlu0 %210, %v154_v28  }
 0x27b   :  { %v158_v29 = vpop.permute.xlu1 %157 }
 0x27c   :  { %v165_v30 = vrot.slane %v158_v29, %v308_v16 }
 0x27e   :  { %v167_v32 = vmul.f32 %v165_v30, %v294_v0  ;;  %v168_v33 = vmul.f32 %v165_v30, %v296_v1 }
 0x27f   :  { %v172_v31 = vpop.permute.xlu0 %171 }
 0x280   :  { %v179_v18 = vrot.slane %v172_v31, %v308_v16 }
 0x282   :  { %v181_v34 = vadd.f32 %v179_v18, %v167_v32  ;;  %v182_v35 = vadd.f32 %v179_v18, %v168_v33 }
 0x284   :  { %183 = vst [vmem:[#allocation5] sm:$0xff] %v181_v34  ;;  %184 = vst [vmem:[#allocation5 + $0x8] sm:$0xff] %v182_v35 }
 0x285   :  { %248 = shalt.err (!%p245_p9)
}
 0x286   :  { %196 = dma.vmem_to_hbm [thread:$0]  %s191_s23, 256, %s356_s3, [#allocation4], %s262_s15, %s262_s15, %s263_s16  }
 0x287   :  { %259 = dma.done.wait [#allocation4], 256  }
 0x288   :  { %260 = vsyncadd [#allocation4], 4294967040 }
 0x289   :  { %200 = vsyncpa [#allocation3], 1 }
 0x28a   :  { %201 = vsyncpa [#allocation4], 1 }

</bundles_post_ra>
